<compile_context>
chip_gen: v5e
topology: v5e:2x2
jax: 0.10.0
libtpu: 0.0.40
codegen_flags: <defaults>
</compile_context>

<pallas_src>
import functools
import math

import jax
import jax.numpy as jnp
from jax import lax
from jax.experimental import pallas as pl
from jax.experimental.pallas import tpu as pltpu


def pack_conv_weight(weight_oihw, width):
    """OIHW (Cout, Cin, KH, KW) -> block-banded bf16 (KH, width*Cin, width*Cout).

    Folds the KW taps and the width-axis zero padding (pad = KW // 2) into a
    lane-dense RHS so a KHxKW conv becomes KH matmuls of
    (rows, width*Cin) @ (width*Cin, width*Cout).  Done once per weight (hoisted
    out of the forward path).  Stored in bf16: MXU-native operand dtype.
    """
    c_out, c_in, kh_size, kw_size = weight_oihw.shape
    pad_w = kw_size // 2
    w_hwio = jnp.transpose(weight_oihw, (2, 3, 1, 0)).astype(jnp.float32)
    rows = []
    for kh in range(kh_size):
        blk = jnp.zeros((width * c_in, width * c_out), jnp.float32)
        for kw in range(kw_size):
            # ones where input column block (w + kw - pad) feeds output block w;
            # the eye offset also implements the zero padding at the W edges.
            band = jnp.eye(width, width, k=pad_w - kw, dtype=jnp.float32)
            blk = blk + jnp.kron(band, w_hwio[kh, kw])
        rows.append(blk)
    return jnp.stack(rows, axis=0).astype(jnp.bfloat16)


def _pick_batch_block(n, h, wc, itemsize, *, target_block_bytes=1 << 20,
                      min_steps=4, bpb_cap=32):
    """Batches per grid step.  Big enough to amortize per-step grid overhead and
    fill the MXU M dim (M = bpb*(H+2) - 2), small enough to keep >= min_steps
    grid steps for DMA/compute overlap and to stay well below the scoped-VMEM
    limit (re-derive against 64 MiB when retiling for v7x).  Always a divisor
    of n, so no batches are ever dropped."""
    per_batch = max(1, h * wc * itemsize)
    cap = max(1, min(bpb_cap, target_block_bytes // per_batch))
    cap = min(cap, max(1, n // min_steps))
    bpb = 1
    for d in range(1, int(cap) + 1):
        if n % d == 0:
            bpb = d
    return bpb


def _resblock_main_kernel(x_ref, b1_ref, b2_ref, o_ref, pad1_ref, pad2_ref, *,
                          h, wc, kh_size, bpb):
    # x_ref  : (bpb, H, W*C)        lane-dense input block (W*C = 128 here)
    # bK_ref : (KH, W*C, W*C)       block-banded conv weights, bf16
    # o_ref  : (bpb, H, W*C)        lane-dense output block
    # padK   : (bpb*(H+2p), W*C)    f32 VMEM slabs: all bpb batches stacked with
    #                               per-batch zero halos (stride hp = H + 2p).
    pad = kh_size // 2
    hp = h + 2 * pad
    m = bpb * hp - 2 * pad            # stacked matmul M dimension
    zero_halo = jnp.zeros((pad, wc), jnp.float32)
    zero_pair = jnp.zeros((2 * pad, wc), jnp.float32)

    # Build the padded, batch-stacked input slab.  Halo rows are (re)written
    # every step: a one-time init gated on pl.program_id(0)==0 would be wrong
    # when the "parallel" grid axis is split across TensorCores.
    for b in range(bpb):              # tiny copy bodies; bpb is capped small
        base = b * hp
        pad1_ref[pl.ds(base, pad), :] = zero_halo
        pad1_ref[pl.ds(base + pad, h), :] = x_ref[b]
        pad1_ref[pl.ds(base + pad + h, pad), :] = zero_halo

    def stacked_conv(src_ref, w_ref):
        # KH lane-dense MXU matmuls over all bpb batches at once:
        # (bpb*hp - 2p, wc) @ (wc, wc), bf16 operands, f32 accumulate.
        acc = jnp.zeros((m, wc), jnp.float32)
        for kh in range(kh_size):
            lhs = src_ref[pl.ds(kh, m), :].astype(jnp.bfloat16)
            acc = acc + jnp.dot(lhs, w_ref[kh],
                                preferred_element_type=jnp.float32)
        return acc

    # conv1 + ReLU, written straight into conv2's padded slab.  Row q of the
    # stacked result is output row r of batch b, with q = b*hp + r.
    h1 = jnp.maximum(stacked_conv(pad1_ref, b1_ref), 0.0)
    pad2_ref[pl.ds(0, pad), :] = zero_halo          # batch 0 top halo
    pad2_ref[pl.ds(pad, m), :] = h1                 # one bulk lane-dense store
    for b in range(bpb - 1):                        # re-zero inter-batch halo pairs
        pad2_ref[pl.ds(b * hp + pad + h, 2 * pad), :] = zero_pair
    pad2_ref[pl.ds(pad + m, pad), :] = zero_halo    # last batch bottom halo

    # conv2 + fused residual add, extracted per batch from the stacked result.
    y = stacked_conv(pad2_ref, b2_ref)
    for b in range(bpb):
        o_ref[b] = (y[b * hp:b * hp + h, :] + x_ref[b]).astype(o_ref.dtype)


def _resblock_main_pallas(x_folded, b1_packed, b2_packed, *, bpb=None):
    """x_folded: (N, H, W*C) lane-dense activations; returns the same layout."""
    n, h, wc = x_folded.shape
    kh_size = b1_packed.shape[0]
    pad = kh_size // 2
    hp = h + 2 * pad

    if bpb is None:
        bpb = _pick_batch_block(n, h, wc, x_folded.dtype.itemsize)
    if n % bpb != 0:
        raise ValueError(f"batch {n} not divisible by batches-per-block {bpb}")
    grid = (n // bpb,)

    kernel = functools.partial(_resblock_main_kernel,
                               h=h, wc=wc, kh_size=kh_size, bpb=bpb)

    # Explicit VMEM budget: double-buffered in/out activation blocks,
    # (double-buffered) bf16 weights, two stacked f32 pad scratches, headroom.
    block_bytes = bpb * h * wc * x_folded.dtype.itemsize
    weight_bytes = (b1_packed.size + b2_packed.size) * b1_packed.dtype.itemsize
    scratch_bytes = 2 * bpb * hp * wc * 4
    est = 2 * 2 * block_bytes + 2 * weight_bytes + scratch_bytes
    vmem_limit = int(min(max(4 * est, 16 << 20), 32 << 20))

    return pl.pallas_call(
        kernel,
        out_shape=jax.ShapeDtypeStruct((n, h, wc), x_folded.dtype),
        grid_spec=pltpu.PrefetchScalarGridSpec(
            num_scalar_prefetch=0,
            grid=grid,
            in_specs=[
                pl.BlockSpec((bpb, h, wc), lambda i: (i, 0, 0)),
                # Grid-invariant weight blocks (constant index_map): DMA'd once.
                pl.BlockSpec(b1_packed.shape, lambda i: (0, 0, 0)),
                pl.BlockSpec(b2_packed.shape, lambda i: (0, 0, 0)),
            ],
            out_specs=pl.BlockSpec((bpb, h, wc), lambda i: (i, 0, 0)),
            scratch_shapes=[
                pltpu.VMEM((bpb * hp, wc), jnp.float32),
                pltpu.VMEM((bpb * hp, wc), jnp.float32),
            ],
        ),
        compiler_params=pltpu.CompilerParams(
            dimension_semantics=("parallel",),
            vmem_limit_bytes=vmem_limit),
    )(x_folded, b1_packed, b2_packed)


@functools.partial(jax.jit, static_argnames=("bpb",))
def resblock_fft_bench_forward(x_nchw, b1_packed, b2_packed, *, bpb=None):
    """ResBlock_fft_bench.forward: conv2(relu(conv1(x))) + x   (NCHW in/out)."""
    n, c, hh, ww = x_nchw.shape
    # Layout glue: NCHW -> lane-dense (N, H, W*C).  A model carrying NHWC makes
    # these transposes disappear.
    x_folded = jnp.transpose(x_nchw, (0, 2, 3, 1)).reshape(n, hh, ww * c)
    y = _resblock_main_pallas(x_folded, b1_packed, b2_packed, bpb=bpb)
    return jnp.transpose(y.reshape(n, hh, ww, c), (0, 3, 1, 2))


# ----------------------------- references ----------------------------------

def _conv3x3(v, w):
    return lax.conv_general_dilated(
        v, w, window_strides=(1, 1), padding=[(1, 1), (1, 1)],
        dimension_numbers=("NCHW", "OIHW", "NCHW"))


def _reference_f32(x, w1, w2):
    return _conv3x3(jnp.maximum(_conv3x3(x, w1), 0.0), w2) + x


def _reference_bf16_mirror(x, w1, w2):
    # Mirrors the kernel's bf16 MXU operand rounding of the conv1->conv2
    # intermediate (inputs/weights are already snapped to the bf16 grid, so
    # everything else is exact).
    h1 = jnp.maximum(_conv3x3(x, w1), 0.0)
    h1 = h1.astype(jnp.bfloat16).astype(jnp.float32)
    return _conv3x3(h1, w2) + x


if __name__ == "__main__":
    # ResBlock_fft_bench(n_feat=8) on a (2, 8, 16, 16) input: W * n_feat = 128,
    # so the activation lane axis is exactly one full vreg lane group.
    N, C, H, W = 2, 8, 16, 16
    K = 3

    key = jax.random.PRNGKey(0)
    kx, k1, k2 = jax.random.split(key, 3)

    def snap_bf16(a):   # keep test values exactly representable in bf16
        return a.astype(jnp.bfloat16).astype(jnp.float32)

    x = snap_bf16(jax.random.normal(kx, (N, C, H, W), dtype=jnp.float32))
    bound = 1.0 / math.sqrt(C * K * K)
    w1 = snap_bf16(jax.random.uniform(k1, (C, C, K, K), minval=-bound,
                                      maxval=bound, dtype=jnp.float32))
    w2 = snap_bf16(jax.random.uniform(k2, (C, C, K, K), minval=-bound,
                                      maxval=bound, dtype=jnp.float32))

    # Weight packing hoisted out of the per-call path (done once).
    b1 = pack_conv_weight(w1, W)   # (3, W*C, W*C) = (3, 128, 128) bf16
    b2 = pack_conv_weight(w2, W)

    ref_mirror = _reference_bf16_mirror(x, w1, w2)
    ref_f32 = _reference_f32(x, w1, w2)

    # Exercise both tiling paths: the default policy (bpb=1, grid=(2,)) and the
    # batch-stacked path (bpb=2 -> one (34,128)@(128,128) matmul per conv tap).
    for bpb in (None, 2):
        out = jax.block_until_ready(
            resblock_fft_bench_forward(x, b1, b2, bpb=bpb))
        assert out.shape == (N, C, H, W), out.shape
        assert jnp.allclose(out, ref_mirror, atol=1e-3, rtol=1e-3), (
            bpb, float(jnp.max(jnp.abs(out - ref_mirror))))
        assert jnp.allclose(out, ref_f32, atol=5e-2, rtol=5e-2), (
            bpb, float(jnp.max(jnp.abs(out - ref_f32))))

    print("KERNEL_OK")
</pallas_src>

<mosaic_0001>
module attributes {stable_mosaic.version = 11 : i64} {
  func.func @_resblock_main_kernel(%arg0: i32, %arg1: memref<1x16x128xf32, #tpu.memory_space<vmem>>, %arg2: memref<3x128x128xbf16, #tpu.memory_space<vmem>>, %arg3: memref<3x128x128xbf16, #tpu.memory_space<vmem>>, %arg4: memref<1x16x128xf32, #tpu.memory_space<vmem>>, %arg5: memref<18x128xf32, #tpu.memory_space<vmem>>, %arg6: memref<18x128xf32, #tpu.memory_space<vmem>>) attributes {dimension_semantics = [#tpu.dimension_semantics<parallel>], iteration_bounds = array<i64: 2>, scalar_prefetch = 0 : i64, scratch_operands = 2 : i64, tpu.core_type = #tpu.core_type<tc>, window_params = [{transform_indices = @transform_0, window_bounds = array<i64: 1, 16, 128>}, {pipeline_mode = #tpu.pipeline_mode<synchronous>, transform_indices = @transform_1, window_bounds = array<i64: 3, 128, 128>}, {pipeline_mode = #tpu.pipeline_mode<synchronous>, transform_indices = @transform_2, window_bounds = array<i64: 3, 128, 128>}, {transform_indices = @transform_3, window_bounds = array<i64: 1, 16, 128>}]} {
    %cst = arith.constant 0.000000e+00 : f32
    %0 = vector.broadcast %cst : f32 to vector<1x128xf32>
    %c0 = arith.constant 0 : index
    %c0_0 = arith.constant 0 : index
    %1 = vector.load %arg5[%c0, %c0_0] : memref<18x128xf32, #tpu.memory_space<vmem>>, vector<1x128xf32>
    tpu.vector_store %arg5[%c0, %c0_0], %0 {strides = array<i32>} : memref<18x128xf32, #tpu.memory_space<vmem>>, vector<1x128xf32>,
    %c0_1 = arith.constant 0 : index
    %c0_2 = arith.constant 0 : index
    %c0_3 = arith.constant 0 : index
    %2 = vector.load %arg1[%c0_1, %c0_2, %c0_3] : memref<1x16x128xf32, #tpu.memory_space<vmem>>, vector<1x16x128xf32>
    %3 = vector.shape_cast %2 : vector<1x16x128xf32> to vector<16x128xf32>
    %c1 = arith.constant 1 : index
    %c0_4 = arith.constant 0 : index
    %4 = vector.load %arg5[%c1, %c0_4] : memref<18x128xf32, #tpu.memory_space<vmem>>, vector<16x128xf32>
    tpu.vector_store %arg5[%c1, %c0_4], %3 {strides = array<i32>} : memref<18x128xf32, #tpu.memory_space<vmem>>, vector<16x128xf32>,
    %c17 = arith.constant 17 : index
    %c0_5 = arith.constant 0 : index
    %5 = vector.load %arg5[%c17, %c0_5] : memref<18x128xf32, #tpu.memory_space<vmem>>, vector<1x128xf32>
    tpu.vector_store %arg5[%c17, %c0_5], %0 {strides = array<i32>} : memref<18x128xf32, #tpu.memory_space<vmem>>, vector<1x128xf32>,
    %cst_6 = arith.constant 0.000000e+00 : f32
    %6 = vector.broadcast %cst_6 : f32 to vector<16x128xf32>
    %c0_7 = arith.constant 0 : index
    %c0_8 = arith.constant 0 : index
    %7 = vector.load %arg5[%c0_7, %c0_8] : memref<18x128xf32, #tpu.memory_space<vmem>>, vector<16x128xf32>
    %8 = arith.truncf %7 : vector<16x128xf32> to vector<16x128xbf16>
    %c0_9 = arith.constant 0 : index
    %c0_10 = arith.constant 0 : index
    %c0_11 = arith.constant 0 : index
    %9 = vector.load %arg2[%c0_9, %c0_10, %c0_11] : memref<3x128x128xbf16, #tpu.memory_space<vmem>>, vector<1x128x128xbf16>
    %10 = vector.shape_cast %9 : vector<1x128x128xbf16> to vector<128x128xbf16>
    %cst_12 = arith.constant dense<0.000000e+00> : vector<16x128xf32>
    %11 = tpu.matmul %8, %10, %cst_12 {dimension_numbers = #tpu.dot_dimension_numbers<[1], [0], [0], [1], [0, 0, 1, 1], [], []>} : vector<16x128xbf16>, vector<128x128xbf16>, vector<16x128xf32> -> vector<16x128xf32>
    %12 = arith.addf %6, %11 : vector<16x128xf32>
    %c1_13 = arith.constant 1 : index
    %c0_14 = arith.constant 0 : index
    %13 = vector.load %arg5[%c1_13, %c0_14] : memref<18x128xf32, #tpu.memory_space<vmem>>, vector<16x128xf32>
    %14 = arith.truncf %13 : vector<16x128xf32> to vector<16x128xbf16>
    %c1_15 = arith.constant 1 : index
    %c0_16 = arith.constant 0 : index
    %c0_17 = arith.constant 0 : index
    %15 = vector.load %arg2[%c1_15, %c0_16, %c0_17] : memref<3x128x128xbf16, #tpu.memory_space<vmem>>, vector<1x128x128xbf16>
    %16 = vector.shape_cast %15 : vector<1x128x128xbf16> to vector<128x128xbf16>
    %cst_18 = arith.constant dense<0.000000e+00> : vector<16x128xf32>
    %17 = tpu.matmul %14, %16, %cst_18 {dimension_numbers = #tpu.dot_dimension_numbers<[1], [0], [0], [1], [0, 0, 1, 1], [], []>} : vector<16x128xbf16>, vector<128x128xbf16>, vector<16x128xf32> -> vector<16x128xf32>
    %18 = arith.addf %12, %17 : vector<16x128xf32>
    %c2 = arith.constant 2 : index
    %c0_19 = arith.constant 0 : index
    %19 = vector.load %arg5[%c2, %c0_19] : memref<18x128xf32, #tpu.memory_space<vmem>>, vector<16x128xf32>
    %20 = arith.truncf %19 : vector<16x128xf32> to vector<16x128xbf16>
    %c2_20 = arith.constant 2 : index
    %c0_21 = arith.constant 0 : index
    %c0_22 = arith.constant 0 : index
    %21 = vector.load %arg2[%c2_20, %c0_21, %c0_22] : memref<3x128x128xbf16, #tpu.memory_space<vmem>>, vector<1x128x128xbf16>
    %22 = vector.shape_cast %21 : vector<1x128x128xbf16> to vector<128x128xbf16>
    %cst_23 = arith.constant dense<0.000000e+00> : vector<16x128xf32>
    %23 = tpu.matmul %20, %22, %cst_23 {dimension_numbers = #tpu.dot_dimension_numbers<[1], [0], [0], [1], [0, 0, 1, 1], [], []>} : vector<16x128xbf16>, vector<128x128xbf16>, vector<16x128xf32> -> vector<16x128xf32>
    %24 = arith.addf %18, %23 : vector<16x128xf32>
    %cst_24 = arith.constant 0.000000e+00 : f32
    %25 = vector.broadcast %cst_24 : f32 to vector<16x128xf32>
    %26 = arith.maximumf %24, %25 : vector<16x128xf32>
    %c0_25 = arith.constant 0 : index
    %c0_26 = arith.constant 0 : index
    %27 = vector.load %arg6[%c0_25, %c0_26] : memref<18x128xf32, #tpu.memory_space<vmem>>, vector<1x128xf32>
    tpu.vector_store %arg6[%c0_25, %c0_26], %0 {strides = array<i32>} : memref<18x128xf32, #tpu.memory_space<vmem>>, vector<1x128xf32>,
    %c1_27 = arith.constant 1 : index
    %c0_28 = arith.constant 0 : index
    %28 = vector.load %arg6[%c1_27, %c0_28] : memref<18x128xf32, #tpu.memory_space<vmem>>, vector<16x128xf32>
    tpu.vector_store %arg6[%c1_27, %c0_28], %26 {strides = array<i32>} : memref<18x128xf32, #tpu.memory_space<vmem>>, vector<16x128xf32>,
    %c17_29 = arith.constant 17 : index
    %c0_30 = arith.constant 0 : index
    %29 = vector.load %arg6[%c17_29, %c0_30] : memref<18x128xf32, #tpu.memory_space<vmem>>, vector<1x128xf32>
    tpu.vector_store %arg6[%c17_29, %c0_30], %0 {strides = array<i32>} : memref<18x128xf32, #tpu.memory_space<vmem>>, vector<1x128xf32>,
    %cst_31 = arith.constant 0.000000e+00 : f32
    %30 = vector.broadcast %cst_31 : f32 to vector<16x128xf32>
    %c0_32 = arith.constant 0 : index
    %c0_33 = arith.constant 0 : index
    %31 = vector.load %arg6[%c0_32, %c0_33] : memref<18x128xf32, #tpu.memory_space<vmem>>, vector<16x128xf32>
    %32 = arith.truncf %31 : vector<16x128xf32> to vector<16x128xbf16>
    %c0_34 = arith.constant 0 : index
    %c0_35 = arith.constant 0 : index
    %c0_36 = arith.constant 0 : index
    %33 = vector.load %arg3[%c0_34, %c0_35, %c0_36] : memref<3x128x128xbf16, #tpu.memory_space<vmem>>, vector<1x128x128xbf16>
    %34 = vector.shape_cast %33 : vector<1x128x128xbf16> to vector<128x128xbf16>
    %cst_37 = arith.constant dense<0.000000e+00> : vector<16x128xf32>
    %35 = tpu.matmul %32, %34, %cst_37 {dimension_numbers = #tpu.dot_dimension_numbers<[1], [0], [0], [1], [0, 0, 1, 1], [], []>} : vector<16x128xbf16>, vector<128x128xbf16>, vector<16x128xf32> -> vector<16x128xf32>
    %36 = arith.addf %30, %35 : vector<16x128xf32>
    %c1_38 = arith.constant 1 : index
    %c0_39 = arith.constant 0 : index
    %37 = vector.load %arg6[%c1_38, %c0_39] : memref<18x128xf32, #tpu.memory_space<vmem>>, vector<16x128xf32>
    %38 = arith.truncf %37 : vector<16x128xf32> to vector<16x128xbf16>
    %c1_40 = arith.constant 1 : index
    %c0_41 = arith.constant 0 : index
    %c0_42 = arith.constant 0 : index
    %39 = vector.load %arg3[%c1_40, %c0_41, %c0_42] : memref<3x128x128xbf16, #tpu.memory_space<vmem>>, vector<1x128x128xbf16>
    %40 = vector.shape_cast %39 : vector<1x128x128xbf16> to vector<128x128xbf16>
    %cst_43 = arith.constant dense<0.000000e+00> : vector<16x128xf32>
    %41 = tpu.matmul %38, %40, %cst_43 {dimension_numbers = #tpu.dot_dimension_numbers<[1], [0], [0], [1], [0, 0, 1, 1], [], []>} : vector<16x128xbf16>, vector<128x128xbf16>, vector<16x128xf32> -> vector<16x128xf32>
    %42 = arith.addf %36, %41 : vector<16x128xf32>
    %c2_44 = arith.constant 2 : index
    %c0_45 = arith.constant 0 : index
    %43 = vector.load %arg6[%c2_44, %c0_45] : memref<18x128xf32, #tpu.memory_space<vmem>>, vector<16x128xf32>
    %44 = arith.truncf %43 : vector<16x128xf32> to vector<16x128xbf16>
    %c2_46 = arith.constant 2 : index
    %c0_47 = arith.constant 0 : index
    %c0_48 = arith.constant 0 : index
    %45 = vector.load %arg3[%c2_46, %c0_47, %c0_48] : memref<3x128x128xbf16, #tpu.memory_space<vmem>>, vector<1x128x128xbf16>
    %46 = vector.shape_cast %45 : vector<1x128x128xbf16> to vector<128x128xbf16>
    %cst_49 = arith.constant dense<0.000000e+00> : vector<16x128xf32>
    %47 = tpu.matmul %44, %46, %cst_49 {dimension_numbers = #tpu.dot_dimension_numbers<[1], [0], [0], [1], [0, 0, 1, 1], [], []>} : vector<16x128xbf16>, vector<128x128xbf16>, vector<16x128xf32> -> vector<16x128xf32>
    %48 = arith.addf %42, %47 : vector<16x128xf32>
    %c0_50 = arith.constant 0 : index
    %c0_51 = arith.constant 0 : index
    %c0_52 = arith.constant 0 : index
    %49 = vector.load %arg1[%c0_50, %c0_51, %c0_52] : memref<1x16x128xf32, #tpu.memory_space<vmem>>, vector<1x16x128xf32>
    %50 = vector.shape_cast %49 : vector<1x16x128xf32> to vector<16x128xf32>
    %51 = arith.addf %48, %50 : vector<16x128xf32>
    %c0_53 = arith.constant 0 : index
    %c0_54 = arith.constant 0 : index
    %c0_55 = arith.constant 0 : index
    %52 = vector.load %arg4[%c0_53, %c0_54, %c0_55] : memref<1x16x128xf32, #tpu.memory_space<vmem>>, vector<1x16x128xf32>
    %53 = vector.shape_cast %52 : vector<1x16x128xf32> to vector<16x128xf32>
    %54 = vector.shape_cast %51 : vector<16x128xf32> to vector<1x16x128xf32>
    tpu.vector_store %arg4[%c0_53, %c0_54, %c0_55], %54 {strides = array<i32>} : memref<1x16x128xf32, #tpu.memory_space<vmem>>, vector<1x16x128xf32>,
    return
  }
  func.func @transform_0(%arg0: i32) -> (i32, i32, i32) {
    %c0_i32 = arith.constant 0 : i32
    %c0_i32_0 = arith.constant 0 : i32
    %c0_i32_1 = arith.constant 0 : i32
    return %arg0, %c0_i32, %c0_i32_0 : i32, i32, i32
  }
  func.func @transform_1(%arg0: i32) -> (i32, i32, i32) {
    %c0_i32 = arith.constant 0 : i32
    %c0_i32_0 = arith.constant 0 : i32
    %c0_i32_1 = arith.constant 0 : i32
    %c0_i32_2 = arith.constant 0 : i32
    return %c0_i32, %c0_i32_0, %c0_i32_1 : i32, i32, i32
  }
  func.func @transform_2(%arg0: i32) -> (i32, i32, i32) {
    %c0_i32 = arith.constant 0 : i32
    %c0_i32_0 = arith.constant 0 : i32
    %c0_i32_1 = arith.constant 0 : i32
    %c0_i32_2 = arith.constant 0 : i32
    return %c0_i32, %c0_i32_0, %c0_i32_1 : i32, i32, i32
  }
  func.func @transform_3(%arg0: i32) -> (i32, i32, i32) {
    %c0_i32 = arith.constant 0 : i32
    %c0_i32_0 = arith.constant 0 : i32
    %c0_i32_1 = arith.constant 0 : i32
    return %arg0, %c0_i32, %c0_i32_0 : i32, i32, i32
  }
}

</mosaic_0001>

<bundles_post_ra>
// kernel: resblock_fft_bench_forward.1
= control target key start
LH: loop header
LB: loop body
LE: loop exit
PB: predicated region body
PF: predicated region fallthrough
CT: control target
= control target key end

     0   :  { %s1093_s12 = smov 0   ;;  %s1271_s0 = inlined_call_operand.vmem [shape: f32[2,16,128], index: 0, kind: input, shape index: {}]   ;;  %s1272_s1 = inlined_call_operand.vmem [shape: bf16[3,128,128], index: 1, kind: input, shape index: {}]   ;;  %s1273_s2 = inlined_call_operand.vmem [shape: bf16[3,128,128], index: 2, kind: input, shape index: {}]   ;;  %s1274_s3 = inlined_call_operand.vmem [shape: f32[2,16,128], index: 3, kind: output, shape index: {}]  }
   0x1 LB: > { %s738_s13 = sadd.s32 4294967295, %s1070_s12   ;;  %p742_p0 = scmp.ge.s32.totalorder %s1070_s12, 1  ;;  %s1070_s12 = sphi %s1093_s12, %s13_s12  }
   0x2   : > { %p137_p1 = scmp.lt.s32.totalorder %s1070_s12, 3 }
   0x4   : > { %p138_p2 = pnand %p742_p0, %p137_p1 }
   0x5   : > { %p161_p3 = scmp.lt.s32.totalorder (!%p138_p2), %s738_s13, 1 }
   0x6   : > { %141 = sbr.rel (%p138_p2) target bundleno = 340 (0x154), region = 32 }
   0xb   : > { %v1022_v0 = vld [vmem:[%s1272_s1 + $0x78] sm:$0xff]  ;;  %v1072_v3 = vmov 0.0   ;;  %v1021_v4 = vld [vmem:[%s1272_s1 + $0x70] sm:$0xff]  ;;  %s1276_s13 = smov (!%p161_p3, %s738_s13), 1  ;;  %v1020_v7 = vld [vmem:[%s1272_s1 + $0x68] sm:$0xff] }
   0xc   : > { %v1014_v1 = vld [vmem:[%s1272_s1 + $0x38] sm:$0xff]  ;;  %171 = vst [vmem:[#allocation2] sm:$0x1] %v1072_v3  ;;  %264 = vmatpush.bf16.msra.mxu0 %v1022_v0  ;;  %v1013_v5 = vld [vmem:[%s1272_s1 + $0x30] sm:$0xff]  ;;  %s1005_s26 = sshll.u32 %s1276_s13, 4  ;;  %v1012_v8 = vld [vmem:[%s1272_s1 + $0x28] sm:$0xff] }
   0xd   : > { %v1030_v2 = vld [vmem:[%s1272_s1 + $0xb8] sm:$0xff]  ;;  %326 = vmatpush.bf16.msra.mxu1 %v1014_v1  ;;  %176 = vst [vmem:[#allocation2 + $0x11] sm:$0x1] %v1072_v3  ;;  %v1029_v6 = vld [vmem:[%s1272_s1 + $0xb0] sm:$0xff]  ;;  %s165_s29 = scalar_lea.vmem %s1271_s0, %s1005_s26  ;;  %v1028_v9 = vld [vmem:[%s1272_s1 + $0xa8] sm:$0xff]  ;;  %s170_s19 = scalar_lea.vmem %s1274_s3, %s1005_s26 }
   0xe   : > { %408 = vmatpush.bf16.msra.mxu2 %v1030_v2  ;;  %426 = vst [vmem:[#allocation3] sm:$0x1] %v1072_v3  ;;  %v1136_v10 = vld [vmem:[%s165_s29] sm:$0xff]  ;;  %v1138_v11 = vld [vmem:[%s165_s29 + $0x8] sm:$0xff]  ;;  %v1046_v12 = vld [vmem:[%s1273_s2 + $0x78] sm:$0xff] }
   0xf   : > { %429 = vst [vmem:[#allocation3 + $0x11] sm:$0x1] %v1072_v3  ;;  %v1019_v13 = vld [vmem:[%s1272_s1 + $0x60] sm:$0xff]  ;;  %517 = vmatpush.bf16.msra.mxu3 %v1046_v12  ;;  %v1018_v16 = vld [vmem:[%s1272_s1 + $0x58] sm:$0xff]  ;;  %v1017_v19 = vld [vmem:[%s1272_s1 + $0x50] sm:$0xff]  ;;  %v198_v34 = vpack.c.bf16 %v1138_v11, %v1136_v10 }
  0x10   : > { %265 = vmatpush.bf16.msra.mxu0 %v1021_v4  ;;  %174 = vst [vmem:[#allocation2 + $0x1] sm:$0xff] %v1136_v10  ;;  %v1011_v14 = vld [vmem:[%s1272_s1 + $0x20] sm:$0xff]  ;;  %v1010_v17 = vld [vmem:[%s1272_s1 + $0x18] sm:$0xff]  ;;  %v1009_v20 = vld [vmem:[%s1272_s1 + $0x10] sm:$0xff] }
  0x11   : > { %327 = vmatpush.bf16.msra.mxu1 %v1013_v5  ;;  %175 = vst [vmem:[#allocation2 + $0x9] sm:$0xff] %v1138_v11  ;;  %v1027_v15 = vld [vmem:[%s1272_s1 + $0xa0] sm:$0xff]  ;;  %v1026_v18 = vld [vmem:[%s1272_s1 + $0x98] sm:$0xff]  ;;  %v1025_v21 = vld [vmem:[%s1272_s1 + $0x90] sm:$0xff] }
  0x12   : > { %409 = vmatpush.bf16.msra.mxu2 %v1029_v6  ;;  %v1016_v22 = vld [vmem:[%s1272_s1 + $0x48] sm:$0xff]  ;;  %v1015_v25 = vld [vmem:[%s1272_s1 + $0x40] sm:$0xff]  ;;  %v1038_v32 = vld [vmem:[%s1273_s2 + $0x38] sm:$0xff] }
  0x13   : > { %v1008_v23 = vld [vmem:[%s1272_s1 + $0x8] sm:$0xff]  ;;  %v1007_v26 = vld [vmem:[%s1272_s1] sm:$0xff]  ;;  %v1054_v33 = vld [vmem:[%s1273_s2 + $0xb8] sm:$0xff] }
  0x14   : > { %266 = vmatpush.bf16.msra.mxu0 %v1020_v7  ;;  %v1024_v24 = vld [vmem:[%s1272_s1 + $0x88] sm:$0xff]  ;;  %v1023_v27 = vld [vmem:[%s1272_s1 + $0x80] sm:$0xff]  ;;  %v1045_v37 = vld [vmem:[%s1273_s2 + $0x70] sm:$0xff] }
  0x15   : > { %328 = vmatpush.bf16.msra.mxu1 %v1012_v8  ;;  %518 = vmatpush.bf16.msra.mxu3 %v1045_v37  ;;  %v1044_v38 = vld [vmem:[%s1273_s2 + $0x68] sm:$0xff]  ;;  %v1037_v39 = vld [vmem:[%s1273_s2 + $0x30] sm:$0xff]  ;;  %v1043_v41 = vld [vmem:[%s1273_s2 + $0x60] sm:$0xff] }
  0x16   : > { %410 = vmatpush.bf16.msra.mxu2 %v1028_v9  ;;  %v1053_v40 = vld [vmem:[%s1273_s2 + $0xb0] sm:$0xff]  ;;  %v1036_v42 = vld [vmem:[%s1273_s2 + $0x28] sm:$0xff]  ;;  %v1042_v44 = vld [vmem:[%s1273_s2 + $0x58] sm:$0xff] }
  0x17   : > { %v177_v28 = vld [vmem:[#allocation2] sm:$0xff]  ;;  %v1052_v43 = vld [vmem:[%s1273_s2 + $0xa8] sm:$0xff]  ;;  %v1041_v47 = vld [vmem:[%s1273_s2 + $0x50] sm:$0xff] }
  0x18   : > { %267 = vmatpush.bf16.msra.mxu0 %v1019_v13  ;;  %v178_v29 = vld [vmem:[#allocation2 + $0x8] sm:$0xff]  ;;  %v1035_v45 = vld [vmem:[%s1273_s2 + $0x20] sm:$0xff]  ;;  %v1034_v48 = vld [vmem:[%s1273_s2 + $0x18] sm:$0xff] }
  0x19   : > { %329 = vmatpush.bf16.msra.mxu1 %v1011_v14  ;;  %v340_v30 = vld [vmem:[#allocation2 + $0x2] sm:$0xff]  ;;  %v341_v31 = vld [vmem:[#allocation2 + $0xa] sm:$0xff]  ;;  %v179_v35 = vpack.c.bf16 %v178_v29, %v177_v28  ;;  %519 = vmatpush.bf16.msra.mxu3 %v1044_v38  ;;  %v1050_v49 = vld [vmem:[%s1273_s2 + $0x98] sm:$0xff] }
  0x1a   : > { %411 = vmatpush.bf16.msra.mxu2 %v1027_v15  ;;  %v342_v36 = vpack.c.bf16 %v341_v31, %v340_v30  ;;  %v1051_v46 = vld [vmem:[%s1273_s2 + $0xa0] sm:$0xff]  ;;  %v1040_v50 = vld [vmem:[%s1273_s2 + $0x48] sm:$0xff]  ;;  %v1033_v51 = vld [vmem:[%s1273_s2 + $0x10] sm:$0xff] }
  0x1b   : > { %v1049_v52 = vld [vmem:[%s1273_s2 + $0x90] sm:$0xff]  ;;  %v1039_v53 = vld [vmem:[%s1273_s2 + $0x40] sm:$0xff]  ;;  %v1032_v54 = vld [vmem:[%s1273_s2 + $0x8] sm:$0xff] }
  0x1c   : > { %268 = vmatpush.bf16.msra.mxu0 %v1018_v16  ;;  %v1048_v55 = vld [vmem:[%s1273_s2 + $0x88] sm:$0xff]  ;;  %v1031_v56 = vld [vmem:[%s1273_s2] sm:$0xff] }
  0x1d   : > { %330 = vmatpush.bf16.msra.mxu1 %v1010_v17  ;;  %520 = vmatpush.bf16.msra.mxu3 %v1043_v41  ;;  %v1047_v57 = vld [vmem:[%s1273_s2 + $0x80] sm:$0xff] }
  0x1e   : > { %412 = vmatpush.bf16.msra.mxu2 %v1026_v18 }
  0x20   : > { %269 = vmatpush.bf16.msra.mxu0 %v1017_v19 }
  0x21   : > { %331 = vmatpush.bf16.msra.mxu1 %v1009_v20  ;;  %521 = vmatpush.bf16.msra.mxu3 %v1042_v44 }
  0x22   : > { %413 = vmatpush.bf16.msra.mxu2 %v1025_v21 }
  0x24   : > { %270 = vmatpush.bf16.msra.mxu0 %v1016_v22 }
  0x25   : > { %332 = vmatpush.bf16.msra.mxu1 %v1008_v23  ;;  %522 = vmatpush.bf16.msra.mxu3 %v1041_v47 }
  0x26   : > { %414 = vmatpush.bf16.msra.mxu2 %v1024_v24 }
  0x28   : > { %271 = vmatpush.bf16.msra.mxu0 %v1015_v25 }
  0x29   : > { %333 = vmatpush.bf16.msra.mxu1 %v1007_v26  ;;  %523 = vmatpush.bf16.msra.mxu3 %v1040_v50 }
  0x2a   : > { %415 = vmatpush.bf16.msra.mxu2 %v1023_v27 }
  0x2b   : > { %272 = vmatmul.bf16.vlgmr.msra.gmra.mxu0 %v198_v34 }
  0x2c   : > { %579 = vmatpush.bf16.msrb.mxu0 %v1038_v32  ;;  %334 = vmatmul.bf16.vlgmr.msra.gmra.mxu1 %v179_v35 }
  0x2d   : > { %661 = vmatpush.bf16.msrb.mxu1 %v1054_v33  ;;  %416 = vmatmul.bf16.vlgmr.msra.gmra.mxu2 %v342_v36 }
  0x2e   : > { %524 = vmatpush.bf16.msra.mxu3 %v1039_v53 }
  0x30   : > { %580 = vmatpush.bf16.msrb.mxu0 %v1037_v39 }
  0x31   : > { %662 = vmatpush.bf16.msrb.mxu1 %v1053_v40 }
  0x34   : > { %581 = vmatpush.bf16.msrb.mxu0 %v1036_v42 }
  0x35   : > { %663 = vmatpush.bf16.msrb.mxu1 %v1052_v43 }
  0x38   : > { %582 = vmatpush.bf16.msrb.mxu0 %v1035_v45 }
  0x39   : > { %664 = vmatpush.bf16.msrb.mxu1 %v1051_v46 }
  0x3c   : > { %583 = vmatpush.bf16.msrb.mxu0 %v1034_v48 }
  0x3d   : > { %665 = vmatpush.bf16.msrb.mxu1 %v1050_v49 }
  0x40   : > { %584 = vmatpush.bf16.msrb.mxu0 %v1033_v51 }
  0x41   : > { %666 = vmatpush.bf16.msrb.mxu1 %v1049_v52 }
  0x44   : > { %585 = vmatpush.bf16.msrb.mxu0 %v1032_v54 }
  0x45   : > { %667 = vmatpush.bf16.msrb.mxu1 %v1048_v55 }
  0x48   : > { %586 = vmatpush.bf16.msrb.mxu0 %v1031_v56 }
  0x49   : > { %668 = vmatpush.bf16.msrb.mxu1 %v1047_v57 }
  0xa8   : > { %v273_v58 = vpop.f32.mrf.mxu0 }
  0xa9   : > { %v335_v59 = vpop.f32.mrf.mxu1 }
  0xaa   : > { %v336_v60 = vadd.f32 %v335_v59, %v273_v58 }
  0xb0   : > { %v417_v61 = vpop.f32.mrf.mxu2  ;;  %v275_v0 = vpop.f32.mrf.mxu0 }
  0xb1   : > { %v422_v62 = vadd.f32 %v417_v61, %v336_v60  ;;  %v337_v1 = vpop.f32.mrf.mxu1 }
  0xb2   : > { %v338_v2 = vadd.f32 %v337_v1, %v275_v0 }
  0xb3   : > { %v424_v63 = vmax.f32 %v422_v62, 0.0 }
  0xb5   : > { %427 = vst [vmem:[#allocation3 + $0x1] sm:$0xff] %v424_v63 }
  0xb8   : > { %v419_v3 = vpop.f32.mrf.mxu2 }
  0xb9   : > { %v423_v4 = vadd.f32 %v419_v3, %v338_v2 }
  0xbb   : > { %v425_v5 = vmax.f32 %v423_v4, 0.0 }
  0xbc   : > { %v430_v7 = vld [vmem:[#allocation3] sm:$0xff] }
  0xbd   : > { %428 = vst [vmem:[#allocation3 + $0x9] sm:$0xff] %v425_v5  ;;  %v451_v6 = vpack.c.bf16 %v425_v5, %v424_v63 }
  0xbf   : > { %525 = vmatmul.bf16.vlgmr.msra.gmra.mxu3 %v451_v6 }
  0xc4   : > { %v431_v8 = vld [vmem:[#allocation3 + $0x8] sm:$0xff] }
  0xc5   : > { %v593_v9 = vld [vmem:[#allocation3 + $0x2] sm:$0xff]  ;;  %v594_v12 = vld [vmem:[#allocation3 + $0xa] sm:$0xff]  ;;  %v432_v13 = vpack.c.bf16 %v431_v8, %v430_v7 }
  0xc6   : > { %v595_v14 = vpack.c.bf16 %v594_v12, %v593_v9 }
  0xc7   : > { %587 = vmatmul.bf16.vlgmr.msrb.gmra.mxu0 %v432_v13 }
  0xc8   : > { %669 = vmatmul.bf16.vlgmr.msrb.gmra.mxu1 %v595_v14 }
 0x142   : > { %v526_v15 = vpop.f32.mrf.mxu3 }
 0x144   : > { %v588_v16 = vpop.f32.mrf.mxu0 }
 0x145   : > { %v670_v17 = vpop.f32.mrf.mxu1  ;;  %v589_v18 = vadd.f32 %v588_v16, %v526_v15 }
 0x147   : > { %v675_v19 = vadd.f32 %v670_v17, %v589_v18 }
 0x149   : > { %v679_v20 = vadd.f32 %v675_v19, %v1136_v10 }
 0x14a   : > { %v528_v22 = vpop.f32.mrf.mxu3 }
 0x14b   : > { %681 = vst [vmem:[%s170_s19] sm:$0xff] %v679_v20 }
 0x14c   : > { %v590_v21 = vpop.f32.mrf.mxu0 }
 0x14d   : > { %v591_v23 = vadd.f32 %v590_v21, %v528_v22  ;;  %v672_v24 = vpop.f32.mrf.mxu1 }
 0x14f   : > { %v676_v25 = vadd.f32 %v672_v24, %v591_v23 }
 0x151   : > { %v680_v26 = vadd.f32 %v676_v25, %v1138_v11 }
 0x153   : > { %682 = vst [vmem:[%s170_s19 + $0x8] sm:$0xff] %v680_v26 }
 0x154 PF: > { %s13_s12 = sadd.s32 1, %s1070_s12  }
 0x155   : > { %p10_p4 = scmp.ge.s32.totalorder %s13_s12, 4  }
 0x157   :  { %12 = sbr.rel (!%p10_p4) target bundleno = 1 (0x1), region = 66 }

</bundles_post_ra>
